<compile_context>
chip_gen: v7x
topology: tpu7x:2x2x1
jax: 0.10.0
libtpu: 0.0.40
codegen_flags: <defaults>
</compile_context>

<pallas_src>
import math
from collections import OrderedDict

import jax
import jax.numpy as jnp
from jax.experimental import pallas as pl
from jax.experimental.pallas import tpu as pltpu

# ----------------------------- model config ---------------------------------
HIDDEN = 32
NUM_HEADS = 2
HEAD_DIM = HIDDEN // NUM_HEADS
INTERMEDIATE = 64
VOCAB = 100
TYPE_VOCAB = 2
MAX_POS = 64
NUM_LABELS = 4
LOGITS_PAD = 128          # lane-dense classifier output width (>= NUM_LABELS)
LN_EPS = 1e-12


# --------------------------- fused encoder kernel ----------------------------
def _make_fused_kernel(S):
    """One grid step = one sequence: embeddings + encoder layer + classifier."""
    scale = 1.0 / math.sqrt(HEAD_DIM)

    def kernel(ids_ref, tt_ref, mask_ref,
               wemb_ref, pemb_ref, temb_ref,
               ln_e_g, ln_e_b,
               wqkv_ref, bqkv_ref,
               wo_ref, bo_ref,
               ln_a_g, ln_a_b,
               w1_ref, b1_ref, w2_ref, b2_ref,
               ln_o_g, ln_o_b,
               wc_ref, bc_ref,
               out_ref):

        def layernorm(x, g_ref, b_ref):
            mu = jnp.mean(x, axis=-1, keepdims=True)
            xc = x - mu
            var = jnp.mean(xc * xc, axis=-1, keepdims=True)
            return xc * jax.lax.rsqrt(var + LN_EPS) * g_ref[...] + b_ref[...]

        def linear(x, w_ref, b_ref):
            # bf16 operands on the MXU, f32 accumulation; bias/LN stay f32.
            return jnp.dot(x.astype(jnp.bfloat16), w_ref[...],
                           preferred_element_type=jnp.float32) + b_ref[...]

        # ---- fused embedding lookups (no XLA gathers on the host side) ------
        # word: exact gather-by-one-hot matmul (one-hot rows are exact in any
        # MXU pass, so this reproduces the f32 table values exactly).
        ids = ids_ref[...]                                            # (S, 1) i32
        onehot = (ids == jax.lax.broadcasted_iota(jnp.int32, (S, VOCAB), 1)
                  ).astype(jnp.float32)
        emb = jnp.dot(onehot, wemb_ref[...], preferred_element_type=jnp.float32)
        # position: static slice already resident in VMEM.
        emb = emb + pemb_ref[...]                                     # (S, H)
        # token type: 2-row table -> VPU select.
        tt = tt_ref[...]                                              # (S, 1) i32
        emb = emb + jnp.where(tt == 0, temb_ref[0:1, :], temb_ref[1:2, :])

        x = layernorm(emb, ln_e_g, ln_e_b)                            # (S, H) f32

        # ---- fused QKV projection (one MXU pass, 96-wide output) -----------
        qkv = linear(x, wqkv_ref, bqkv_ref)                           # (S, 3H)

        # ---- masked self-attention, softmax batched over heads -------------
        # Mask bias hoisted out of all loops.
        bias = jnp.where(mask_ref[...] > 0, 0.0, -1e9).reshape(1, S)  # (1, S)

        s_parts = []
        for h in range(NUM_HEADS):
            c0 = h * HEAD_DIM
            q = qkv[:, c0:c0 + HEAD_DIM].astype(jnp.bfloat16)
            k = qkv[:, HIDDEN + c0:HIDDEN + c0 + HEAD_DIM].astype(jnp.bfloat16)
            s_parts.append(jax.lax.dot_general(
                q, k, (((1,), (1,)), ((), ())),
                preferred_element_type=jnp.float32) * scale)
        # Pack all head score tiles along sublanes -> one max/exp/sum pass.
        s_all = jnp.concatenate(s_parts, axis=0) + bias               # (H*S, S)
        s_all = s_all - jnp.max(s_all, axis=-1, keepdims=True)
        e = jnp.exp(s_all)
        # EUP reciprocal instead of a VPU divide.
        p_all = (e * pl.reciprocal(jnp.sum(e, axis=-1, keepdims=True),
                                   approx=True)).astype(jnp.bfloat16)

        # P.V per head; contexts stay in registers and are concatenated along
        # lanes (no VMEM scratch, no masked partial stores, no RAW round trip).
        ctx_parts = []
        for h in range(NUM_HEADS):
            c0 = h * HEAD_DIM
            v = qkv[:, 2 * HIDDEN + c0:2 * HIDDEN + c0 + HEAD_DIM
                    ].astype(jnp.bfloat16)
            p = p_all[h * S:(h + 1) * S, :]
            ctx_parts.append(jnp.dot(p, v, preferred_element_type=jnp.float32))
        ctx = jnp.concatenate(ctx_parts, axis=-1)                     # (S, H)

        # ---- output projection + residual + layernorm ----------------------
        attn_out = linear(ctx, wo_ref, bo_ref)
        x = layernorm(attn_out + x, ln_a_g, ln_a_b)

        # ---- feed-forward ---------------------------------------------------
        # TODO(synk): HF BERT uses exact erf GELU; tanh approximation used here.
        h1 = jax.nn.gelu(linear(x, w1_ref, b1_ref), approximate=True)
        h2 = linear(h1, w2_ref, b2_ref)
        x = layernorm(h2 + x, ln_o_g, ln_o_b)

        # ---- classifier head: lane-dense (S, 128) unmasked store -----------
        out_ref[...] = linear(x, wc_ref, bc_ref)

    return kernel


def fused_forward(input_ids, token_type_ids, attention_mask, p):
    """input_ids/token_type_ids/attention_mask: (B, S) int. -> (B*S, LOGITS_PAD)."""
    B, S = input_ids.shape
    M = B * S

    ids_col = input_ids.reshape(M, 1).astype(jnp.int32)
    tt_col = token_type_ids.reshape(M, 1).astype(jnp.int32)
    mask3 = attention_mask.reshape(B, 1, S).astype(jnp.int32)
    pos_s = p["pos_emb"][:S]                                          # (S, H)

    def resident(arr):
        nd = arr.ndim
        return pl.BlockSpec(arr.shape, lambda b, _nd=nd: (0,) * _nd)

    arrays_specs = [
        (ids_col, pl.BlockSpec((S, 1), lambda b: (b, 0))),
        (tt_col, pl.BlockSpec((S, 1), lambda b: (b, 0))),
        (mask3, pl.BlockSpec((1, 1, S), lambda b: (b, 0, 0))),
        (p["word_emb"], resident(p["word_emb"])),
        (pos_s, resident(pos_s)),
        (p["type_emb"], resident(p["type_emb"])),
        (p["ln_emb_g"], resident(p["ln_emb_g"])),
        (p["ln_emb_b"], resident(p["ln_emb_b"])),
        (p["wqkv"], resident(p["wqkv"])),
        (p["bqkv"], resident(p["bqkv"])),
        (p["wo"], resident(p["wo"])),
        (p["bo"], resident(p["bo"])),
        (p["ln_attn_g"], resident(p["ln_attn_g"])),
        (p["ln_attn_b"], resident(p["ln_attn_b"])),
        (p["w1"], resident(p["w1"])),
        (p["b1"], resident(p["b1"])),
        (p["w2"], resident(p["w2"])),
        (p["b2"], resident(p["b2"])),
        (p["ln_out_g"], resident(p["ln_out_g"])),
        (p["ln_out_b"], resident(p["ln_out_b"])),
        (p["wc_pad"], resident(p["wc_pad"])),
        (p["bc_pad"], resident(p["bc_pad"])),
    ]
    arrays = [a for a, _ in arrays_specs]
    specs = [s for _, s in arrays_specs]

    # NOTE: at real BERT sizes this whole-array resident pattern must become
    # row/contraction tiling re-derived against v7x's 64 MiB VMEM (counting
    # double-buffering) with an explicit vmem_limit_bytes; at these tiny shapes
    # everything fits comfortably.
    return pl.pallas_call(
        _make_fused_kernel(S),
        out_shape=jax.ShapeDtypeStruct((M, LOGITS_PAD), jnp.float32),
        grid=(B,),
        in_specs=specs,
        out_specs=pl.BlockSpec((S, LOGITS_PAD), lambda b: (b, 0)),
        compiler_params=pltpu.CompilerParams(
            dimension_semantics=("parallel",)),   # both TCs on v7x
    )(*arrays)


# --------------------------- synthetic wrapped model --------------------------
def init_params(seed=42):
    ks = jax.random.split(jax.random.PRNGKey(seed), 10)
    n = lambda k, shape: (0.02 * jax.random.normal(k, shape)).astype(jnp.float32)

    wq = n(ks[3], (HIDDEN, HIDDEN))
    wk = n(ks[4], (HIDDEN, HIDDEN))
    wv = n(ks[5], (HIDDEN, HIDDEN))
    wc = n(ks[9], (HIDDEN, NUM_LABELS))
    wc_pad = jnp.zeros((HIDDEN, LOGITS_PAD), jnp.float32).at[:, :NUM_LABELS].set(wc)

    return {
        # embedding tables stay f32 (one-hot in-kernel lookup is exact)
        "word_emb": n(ks[0], (VOCAB, HIDDEN)),
        "pos_emb": n(ks[1], (MAX_POS, HIDDEN)),
        "type_emb": n(ks[2], (TYPE_VOCAB, HIDDEN)),
        "ln_emb_g": jnp.ones((1, HIDDEN), jnp.float32),
        "ln_emb_b": jnp.zeros((1, HIDDEN), jnp.float32),
        # matmul weights in bf16 (MXU-native), biases/LN in f32
        "wqkv": jnp.concatenate([wq, wk, wv], axis=1).astype(jnp.bfloat16),
        "bqkv": jnp.zeros((1, 3 * HIDDEN), jnp.float32),
        "wo": n(ks[6], (HIDDEN, HIDDEN)).astype(jnp.bfloat16),
        "bo": jnp.zeros((1, HIDDEN), jnp.float32),
        "ln_attn_g": jnp.ones((1, HIDDEN), jnp.float32),
        "ln_attn_b": jnp.zeros((1, HIDDEN), jnp.float32),
        "w1": n(ks[7], (HIDDEN, INTERMEDIATE)).astype(jnp.bfloat16),
        "b1": jnp.zeros((1, INTERMEDIATE), jnp.float32),
        "w2": n(ks[8], (INTERMEDIATE, HIDDEN)).astype(jnp.bfloat16),
        "b2": jnp.zeros((1, HIDDEN), jnp.float32),
        "ln_out_g": jnp.ones((1, HIDDEN), jnp.float32),
        "ln_out_b": jnp.zeros((1, HIDDEN), jnp.float32),
        "wc_pad": wc_pad.astype(jnp.bfloat16),
        "bc_pad": jnp.zeros((1, LOGITS_PAD), jnp.float32),
    }


def make_tiny_token_classifier(params):
    """Returns model(input_ids, attention_mask[, token_type_ids]) -> OrderedDict
    mimicking HF TokenClassifierOutput ({"loss": None, "logits": Tensor})."""

    @jax.jit
    def _forward(input_ids, attention_mask, token_type_ids):
        B, S = input_ids.shape
        logits_pad = fused_forward(input_ids, token_type_ids, attention_mask,
                                   params)
        # keep the lane-dense pad inside the kernel; slice lazily here
        return logits_pad[:, :NUM_LABELS].reshape(B, S, NUM_LABELS)

    def forward(input_ids, attention_mask, token_type_ids=None):
        if token_type_ids is None:
            token_type_ids = jnp.zeros_like(input_ids)
        logits = _forward(input_ids, attention_mask, token_type_ids)
        out = OrderedDict()
        out["loss"] = None          # filtered out by the wrapper (non-tensor)
        out["logits"] = logits
        return out

    return forward


# ------------------------------- ModelWrapper ---------------------------------
class ModelWrapper:
    """JAX/Pallas equivalent of the PyTorch ModelWrapper forward pass."""

    def __init__(self, model, include_types: bool) -> None:
        self.model = model
        self.include_types = include_types

    def __call__(self, input_ids, attention_mask, token_type_ids=None):
        # Branch structure mirrors the provided PyTorch spec exactly.
        if self.include_types:
            output = self.model(input_ids, attention_mask)
        else:
            output = self.model(input_ids, attention_mask, token_type_ids)
        if isinstance(output, OrderedDict):  # TokenClassifierOutput analogue
            ret = OrderedDict()
            for key, val in output.items():
                if isinstance(val, jax.Array):
                    ret[key] = val
            return ret
        return output


# ----------------------------------- main --------------------------------------
if __name__ == "__main__":
    B, S = 2, 8
    key = jax.random.PRNGKey(0)
    k_ids, k_types = jax.random.split(key)

    input_ids = jax.random.randint(k_ids, (B, S), 0, VOCAB, dtype=jnp.int32)
    attention_mask = jnp.ones((B, S), jnp.int32).at[1, S - 2:].set(0)
    token_type_ids = jax.random.randint(k_types, (B, S), 0, TYPE_VOCAB,
                                        dtype=jnp.int32)

    params = init_params(seed=42)
    model = make_tiny_token_classifier(params)
    wrapper = ModelWrapper(model, include_types=False)

    out = wrapper(input_ids, attention_mask, token_type_ids)
    logits = jax.block_until_ready(out["logits"])
    assert logits.shape == (B, S, NUM_LABELS)
    assert logits.dtype == jnp.float32
    assert bool(jnp.all(jnp.isfinite(logits)))
    print("KERNEL_OK")
</pallas_src>

<mosaic_0001>
module attributes {stable_mosaic.version = 11 : i64} {
  func.func @kernel(%arg0: i32, %arg1: memref<8x1xi32, #tpu.memory_space<vmem>>, %arg2: memref<8x1xi32, #tpu.memory_space<vmem>>, %arg3: memref<1x1x8xi32, #tpu.memory_space<vmem>>, %arg4: memref<100x32xf32, #tpu.memory_space<vmem>>, %arg5: memref<8x32xf32, #tpu.memory_space<vmem>>, %arg6: memref<2x32xf32, #tpu.memory_space<vmem>>, %arg7: memref<1x32xf32, #tpu.memory_space<vmem>>, %arg8: memref<1x32xf32, #tpu.memory_space<vmem>>, %arg9: memref<32x96xbf16, #tpu.memory_space<vmem>>, %arg10: memref<1x96xf32, #tpu.memory_space<vmem>>, %arg11: memref<32x32xbf16, #tpu.memory_space<vmem>>, %arg12: memref<1x32xf32, #tpu.memory_space<vmem>>, %arg13: memref<1x32xf32, #tpu.memory_space<vmem>>, %arg14: memref<1x32xf32, #tpu.memory_space<vmem>>, %arg15: memref<32x64xbf16, #tpu.memory_space<vmem>>, %arg16: memref<1x64xf32, #tpu.memory_space<vmem>>, %arg17: memref<64x32xbf16, #tpu.memory_space<vmem>>, %arg18: memref<1x32xf32, #tpu.memory_space<vmem>>, %arg19: memref<1x32xf32, #tpu.memory_space<vmem>>, %arg20: memref<1x32xf32, #tpu.memory_space<vmem>>, %arg21: memref<32x128xbf16, #tpu.memory_space<vmem>>, %arg22: memref<1x128xf32, #tpu.memory_space<vmem>>, %arg23: memref<8x128xf32, #tpu.memory_space<vmem>>) attributes {dimension_semantics = [#tpu.dimension_semantics<parallel>], iteration_bounds = array<i64: 2>, scalar_prefetch = 0 : i64, scratch_operands = 0 : i64, tpu.core_type = #tpu.core_type<tc>, window_params = [{transform_indices = @transform_0, window_bounds = array<i64: 8, 1>}, {transform_indices = @transform_1, window_bounds = array<i64: 8, 1>}, {transform_indices = @transform_2, window_bounds = array<i64: 1, 1, 8>}, {pipeline_mode = #tpu.pipeline_mode<synchronous>, transform_indices = @transform_3, window_bounds = array<i64: 100, 32>}, {pipeline_mode = #tpu.pipeline_mode<synchronous>, transform_indices = @transform_4, window_bounds = array<i64: 8, 32>}, {pipeline_mode = #tpu.pipeline_mode<synchronous>, transform_indices = @transform_5, window_bounds = array<i64: 2, 32>}, {pipeline_mode = #tpu.pipeline_mode<synchronous>, transform_indices = @transform_6, window_bounds = array<i64: 1, 32>}, {pipeline_mode = #tpu.pipeline_mode<synchronous>, transform_indices = @transform_7, window_bounds = array<i64: 1, 32>}, {pipeline_mode = #tpu.pipeline_mode<synchronous>, transform_indices = @transform_8, window_bounds = array<i64: 32, 96>}, {pipeline_mode = #tpu.pipeline_mode<synchronous>, transform_indices = @transform_9, window_bounds = array<i64: 1, 96>}, {pipeline_mode = #tpu.pipeline_mode<synchronous>, transform_indices = @transform_10, window_bounds = array<i64: 32, 32>}, {pipeline_mode = #tpu.pipeline_mode<synchronous>, transform_indices = @transform_11, window_bounds = array<i64: 1, 32>}, {pipeline_mode = #tpu.pipeline_mode<synchronous>, transform_indices = @transform_12, window_bounds = array<i64: 1, 32>}, {pipeline_mode = #tpu.pipeline_mode<synchronous>, transform_indices = @transform_13, window_bounds = array<i64: 1, 32>}, {pipeline_mode = #tpu.pipeline_mode<synchronous>, transform_indices = @transform_14, window_bounds = array<i64: 32, 64>}, {pipeline_mode = #tpu.pipeline_mode<synchronous>, transform_indices = @transform_15, window_bounds = array<i64: 1, 64>}, {pipeline_mode = #tpu.pipeline_mode<synchronous>, transform_indices = @transform_16, window_bounds = array<i64: 64, 32>}, {pipeline_mode = #tpu.pipeline_mode<synchronous>, transform_indices = @transform_17, window_bounds = array<i64: 1, 32>}, {pipeline_mode = #tpu.pipeline_mode<synchronous>, transform_indices = @transform_18, window_bounds = array<i64: 1, 32>}, {pipeline_mode = #tpu.pipeline_mode<synchronous>, transform_indices = @transform_19, window_bounds = array<i64: 1, 32>}, {pipeline_mode = #tpu.pipeline_mode<synchronous>, transform_indices = @transform_20, window_bounds = array<i64: 32, 128>}, {pipeline_mode = #tpu.pipeline_mode<synchronous>, transform_indices = @transform_21, window_bounds = array<i64: 1, 128>}, {transform_indices = @transform_22, window_bounds = array<i64: 8, 128>}]} {
    %c0 = arith.constant 0 : index
    %c0_0 = arith.constant 0 : index
    %0 = vector.load %arg1[%c0, %c0_0] : memref<8x1xi32, #tpu.memory_space<vmem>>, vector<8x1xi32>
    %1 = tpu.iota {dimensions = array<i32: 1>} : vector<8x100xi32>
    %2 = vector.broadcast %0 : vector<8x1xi32> to vector<8x100xi32>
    %3 = arith.cmpi eq, %2, %1 : vector<8x100xi32>
    %4 = arith.extui %3 : vector<8x100xi1> to vector<8x100xi32>
    %5 = arith.sitofp %4 : vector<8x100xi32> to vector<8x100xf32>
    %c0_1 = arith.constant 0 : index
    %c0_2 = arith.constant 0 : index
    %6 = vector.load %arg4[%c0_1, %c0_2] : memref<100x32xf32, #tpu.memory_space<vmem>>, vector<100x32xf32>
    %cst = arith.constant dense<0.000000e+00> : vector<8x32xf32>
    %7 = tpu.matmul %5, %6, %cst {dimension_numbers = #tpu.dot_dimension_numbers<[1], [0], [0], [1], [0, 0, 1, 1], [], []>} : vector<8x100xf32>, vector<100x32xf32>, vector<8x32xf32> -> vector<8x32xf32>
    %c0_3 = arith.constant 0 : index
    %c0_4 = arith.constant 0 : index
    %8 = vector.load %arg5[%c0_3, %c0_4] : memref<8x32xf32, #tpu.memory_space<vmem>>, vector<8x32xf32>
    %9 = arith.addf %7, %8 : vector<8x32xf32>
    %c0_5 = arith.constant 0 : index
    %c0_6 = arith.constant 0 : index
    %10 = vector.load %arg2[%c0_5, %c0_6] : memref<8x1xi32, #tpu.memory_space<vmem>>, vector<8x1xi32>
    %c0_i32 = arith.constant 0 : i32
    %11 = vector.broadcast %c0_i32 : i32 to vector<8x1xi32>
    %12 = arith.cmpi eq, %10, %11 : vector<8x1xi32>
    %c0_7 = arith.constant 0 : index
    %c0_8 = arith.constant 0 : index
    %13 = vector.load %arg6[%c0_7, %c0_8] : memref<2x32xf32, #tpu.memory_space<vmem>>, vector<1x32xf32>
    %c1 = arith.constant 1 : index
    %c0_9 = arith.constant 0 : index
    %14 = vector.load %arg6[%c1, %c0_9] : memref<2x32xf32, #tpu.memory_space<vmem>>, vector<1x32xf32>
    %15 = vector.shape_cast %12 : vector<8x1xi1> to vector<8x1xi1>
    %16 = vector.broadcast %15 : vector<8x1xi1> to vector<8x32xi1>
    %17 = vector.shape_cast %13 : vector<1x32xf32> to vector<1x32xf32>
    %18 = vector.broadcast %17 : vector<1x32xf32> to vector<8x32xf32>
    %19 = vector.shape_cast %14 : vector<1x32xf32> to vector<1x32xf32>
    %20 = vector.broadcast %19 : vector<1x32xf32> to vector<8x32xf32>
    %21 = arith.select %16, %18, %20 : vector<8x32xi1>, vector<8x32xf32>
    %22 = arith.addf %9, %21 : vector<8x32xf32>
    %cst_10 = arith.constant dense<0.000000e+00> : vector<8xf32>
    %23 = vector.multi_reduction <add>, %22, %cst_10 [1] : vector<8x32xf32> to vector<8xf32>
    %24 = vector.shape_cast %23 : vector<8xf32> to vector<8x1xf32>
    %cst_11 = arith.constant 3.200000e+01 : f32
    %25 = vector.broadcast %cst_11 : f32 to vector<8x1xf32>
    %26 = arith.divf %24, %25 : vector<8x1xf32>
    %27 = vector.broadcast %26 : vector<8x1xf32> to vector<8x32xf32>
    %28 = arith.subf %22, %27 : vector<8x32xf32>
    %29 = arith.mulf %28, %28 : vector<8x32xf32>
    %cst_12 = arith.constant dense<0.000000e+00> : vector<8xf32>
    %30 = vector.multi_reduction <add>, %29, %cst_12 [1] : vector<8x32xf32> to vector<8xf32>
    %31 = vector.shape_cast %30 : vector<8xf32> to vector<8x1xf32>
    %cst_13 = arith.constant 3.200000e+01 : f32
    %32 = vector.broadcast %cst_13 : f32 to vector<8x1xf32>
    %33 = arith.divf %31, %32 : vector<8x1xf32>
    %cst_14 = arith.constant 9.99999996E-13 : f32
    %34 = vector.broadcast %cst_14 : f32 to vector<8x1xf32>
    %35 = arith.addf %33, %34 : vector<8x1xf32>
    %36 = math.rsqrt %35 : vector<8x1xf32>
    %37 = vector.broadcast %36 : vector<8x1xf32> to vector<8x32xf32>
    %38 = arith.mulf %28, %37 : vector<8x32xf32>
    %c0_15 = arith.constant 0 : index
    %c0_16 = arith.constant 0 : index
    %39 = vector.load %arg7[%c0_15, %c0_16] : memref<1x32xf32, #tpu.memory_space<vmem>>, vector<1x32xf32>
    %40 = vector.broadcast %39 : vector<1x32xf32> to vector<8x32xf32>
    %41 = arith.mulf %38, %40 : vector<8x32xf32>
    %c0_17 = arith.constant 0 : index
    %c0_18 = arith.constant 0 : index
    %42 = vector.load %arg8[%c0_17, %c0_18] : memref<1x32xf32, #tpu.memory_space<vmem>>, vector<1x32xf32>
    %43 = vector.broadcast %42 : vector<1x32xf32> to vector<8x32xf32>
    %44 = arith.addf %41, %43 : vector<8x32xf32>
    %45 = arith.truncf %44 : vector<8x32xf32> to vector<8x32xbf16>
    %c0_19 = arith.constant 0 : index
    %c0_20 = arith.constant 0 : index
    %46 = vector.load %arg9[%c0_19, %c0_20] : memref<32x96xbf16, #tpu.memory_space<vmem>>, vector<32x96xbf16>
    %cst_21 = arith.constant dense<0.000000e+00> : vector<8x96xf32>
    %47 = tpu.matmul %45, %46, %cst_21 {dimension_numbers = #tpu.dot_dimension_numbers<[1], [0], [0], [1], [0, 0, 1, 1], [], []>} : vector<8x32xbf16>, vector<32x96xbf16>, vector<8x96xf32> -> vector<8x96xf32>
    %c0_22 = arith.constant 0 : index
    %c0_23 = arith.constant 0 : index
    %48 = vector.load %arg10[%c0_22, %c0_23] : memref<1x96xf32, #tpu.memory_space<vmem>>, vector<1x96xf32>
    %49 = vector.broadcast %48 : vector<1x96xf32> to vector<8x96xf32>
    %50 = arith.addf %47, %49 : vector<8x96xf32>
    %c0_24 = arith.constant 0 : index
    %c0_25 = arith.constant 0 : index
    %c0_26 = arith.constant 0 : index
    %51 = vector.load %arg3[%c0_24, %c0_25, %c0_26] : memref<1x1x8xi32, #tpu.memory_space<vmem>>, vector<1x1x8xi32>
    %c0_i32_27 = arith.constant 0 : i32
    %52 = vector.broadcast %c0_i32_27 : i32 to vector<1x1x8xi32>
    %53 = arith.cmpi sgt, %51, %52 : vector<1x1x8xi32>
    %cst_28 = arith.constant 0.000000e+00 : f32
    %cst_29 = arith.constant -1.000000e+09 : f32
    %54 = vector.broadcast %cst_28 : f32 to vector<1x1x8xf32>
    %55 = vector.broadcast %cst_29 : f32 to vector<1x1x8xf32>
    %56 = arith.select %53, %54, %55 : vector<1x1x8xi1>, vector<1x1x8xf32>
    %57 = vector.shape_cast %56 : vector<1x1x8xf32> to vector<1x8xf32>
    %58 = vector.extract_strided_slice %50 {offsets = [0, 0], sizes = [8, 16], strides = [1, 1]} : vector<8x96xf32> to vector<8x16xf32>
    %59 = arith.truncf %58 : vector<8x16xf32> to vector<8x16xbf16>
    %60 = vector.extract_strided_slice %50 {offsets = [0, 32], sizes = [8, 16], strides = [1, 1]} : vector<8x96xf32> to vector<8x16xf32>
    %61 = arith.truncf %60 : vector<8x16xf32> to vector<8x16xbf16>
    %cst_30 = arith.constant dense<0.000000e+00> : vector<8x8xf32>
    %62 = tpu.matmul %59, %61, %cst_30 {dimension_numbers = #tpu.dot_dimension_numbers<[1], [1], [0], [0], [0, 0, 1, 0], [], []>} : vector<8x16xbf16>, vector<8x16xbf16>, vector<8x8xf32> -> vector<8x8xf32>
    %cst_31 = arith.constant 2.500000e-01 : f32
    %63 = vector.broadcast %cst_31 : f32 to vector<8x8xf32>
    %64 = arith.mulf %62, %63 : vector<8x8xf32>
    %65 = vector.extract_strided_slice %50 {offsets = [0, 16], sizes = [8, 16], strides = [1, 1]} : vector<8x96xf32> to vector<8x16xf32>
    %66 = arith.truncf %65 : vector<8x16xf32> to vector<8x16xbf16>
    %67 = vector.extract_strided_slice %50 {offsets = [0, 48], sizes = [8, 16], strides = [1, 1]} : vector<8x96xf32> to vector<8x16xf32>
    %68 = arith.truncf %67 : vector<8x16xf32> to vector<8x16xbf16>
    %cst_32 = arith.constant dense<0.000000e+00> : vector<8x8xf32>
    %69 = tpu.matmul %66, %68, %cst_32 {dimension_numbers = #tpu.dot_dimension_numbers<[1], [1], [0], [0], [0, 0, 1, 0], [], []>} : vector<8x16xbf16>, vector<8x16xbf16>, vector<8x8xf32> -> vector<8x8xf32>
    %cst_33 = arith.constant 2.500000e-01 : f32
    %70 = vector.broadcast %cst_33 : f32 to vector<8x8xf32>
    %71 = arith.mulf %69, %70 : vector<8x8xf32>
    %72 = tpu.concatenate %64, %71 in 0 : vector<8x8xf32>, vector<8x8xf32> -> vector<16x8xf32>
    %73 = vector.broadcast %57 : vector<1x8xf32> to vector<16x8xf32>
    %74 = arith.addf %72, %73 : vector<16x8xf32>
    %cst_34 = arith.constant dense<0xFF800000> : vector<16xf32>
    %75 = vector.multi_reduction <maximumf>, %74, %cst_34 [1] : vector<16x8xf32> to vector<16xf32>
    %76 = vector.shape_cast %75 : vector<16xf32> to vector<16x1xf32>
    %77 = vector.broadcast %76 : vector<16x1xf32> to vector<16x8xf32>
    %78 = arith.subf %74, %77 : vector<16x8xf32>
    %79 = math.exp %78 : vector<16x8xf32>
    %cst_35 = arith.constant dense<0.000000e+00> : vector<16xf32>
    %80 = vector.multi_reduction <add>, %79, %cst_35 [1] : vector<16x8xf32> to vector<16xf32>
    %81 = vector.shape_cast %80 : vector<16xf32> to vector<16x1xf32>
    %82 = tpu.reciprocal %81 {approx = true} : vector<16x1xf32> -> vector<16x1xf32>
    %83 = vector.broadcast %82 : vector<16x1xf32> to vector<16x8xf32>
    %84 = arith.mulf %79, %83 : vector<16x8xf32>
    %85 = arith.truncf %84 : vector<16x8xf32> to vector<16x8xbf16>
    %86 = vector.extract_strided_slice %50 {offsets = [0, 64], sizes = [8, 16], strides = [1, 1]} : vector<8x96xf32> to vector<8x16xf32>
    %87 = arith.truncf %86 : vector<8x16xf32> to vector<8x16xbf16>
    %88 = vector.extract_strided_slice %85 {offsets = [0, 0], sizes = [8, 8], strides = [1, 1]} : vector<16x8xbf16> to vector<8x8xbf16>
    %cst_36 = arith.constant dense<0.000000e+00> : vector<8x16xf32>
    %89 = tpu.matmul %88, %87, %cst_36 {dimension_numbers = #tpu.dot_dimension_numbers<[1], [0], [0], [1], [0, 0, 1, 1], [], []>} : vector<8x8xbf16>, vector<8x16xbf16>, vector<8x16xf32> -> vector<8x16xf32>
    %90 = vector.extract_strided_slice %50 {offsets = [0, 80], sizes = [8, 16], strides = [1, 1]} : vector<8x96xf32> to vector<8x16xf32>
    %91 = arith.truncf %90 : vector<8x16xf32> to vector<8x16xbf16>
    %92 = vector.extract_strided_slice %85 {offsets = [8, 0], sizes = [8, 8], strides = [1, 1]} : vector<16x8xbf16> to vector<8x8xbf16>
    %cst_37 = arith.constant dense<0.000000e+00> : vector<8x16xf32>
    %93 = tpu.matmul %92, %91, %cst_37 {dimension_numbers = #tpu.dot_dimension_numbers<[1], [0], [0], [1], [0, 0, 1, 1], [], []>} : vector<8x8xbf16>, vector<8x16xbf16>, vector<8x16xf32> -> vector<8x16xf32>
    %94 = tpu.concatenate %89, %93 in 1 : vector<8x16xf32>, vector<8x16xf32> -> vector<8x32xf32>
    %95 = arith.truncf %94 : vector<8x32xf32> to vector<8x32xbf16>
    %c0_38 = arith.constant 0 : index
    %c0_39 = arith.constant 0 : index
    %96 = vector.load %arg11[%c0_38, %c0_39] : memref<32x32xbf16, #tpu.memory_space<vmem>>, vector<32x32xbf16>
    %cst_40 = arith.constant dense<0.000000e+00> : vector<8x32xf32>
    %97 = tpu.matmul %95, %96, %cst_40 {dimension_numbers = #tpu.dot_dimension_numbers<[1], [0], [0], [1], [0, 0, 1, 1], [], []>} : vector<8x32xbf16>, vector<32x32xbf16>, vector<8x32xf32> -> vector<8x32xf32>
    %c0_41 = arith.constant 0 : index
    %c0_42 = arith.constant 0 : index
    %98 = vector.load %arg12[%c0_41, %c0_42] : memref<1x32xf32, #tpu.memory_space<vmem>>, vector<1x32xf32>
    %99 = vector.broadcast %98 : vector<1x32xf32> to vector<8x32xf32>
    %100 = arith.addf %97, %99 : vector<8x32xf32>
    %101 = arith.addf %100, %44 : vector<8x32xf32>
    %cst_43 = arith.constant dense<0.000000e+00> : vector<8xf32>
    %102 = vector.multi_reduction <add>, %101, %cst_43 [1] : vector<8x32xf32> to vector<8xf32>
    %103 = vector.shape_cast %102 : vector<8xf32> to vector<8x1xf32>
    %cst_44 = arith.constant 3.200000e+01 : f32
    %104 = vector.broadcast %cst_44 : f32 to vector<8x1xf32>
    %105 = arith.divf %103, %104 : vector<8x1xf32>
    %106 = vector.broadcast %105 : vector<8x1xf32> to vector<8x32xf32>
    %107 = arith.subf %101, %106 : vector<8x32xf32>
    %108 = arith.mulf %107, %107 : vector<8x32xf32>
    %cst_45 = arith.constant dense<0.000000e+00> : vector<8xf32>
    %109 = vector.multi_reduction <add>, %108, %cst_45 [1] : vector<8x32xf32> to vector<8xf32>
    %110 = vector.shape_cast %109 : vector<8xf32> to vector<8x1xf32>
    %cst_46 = arith.constant 3.200000e+01 : f32
    %111 = vector.broadcast %cst_46 : f32 to vector<8x1xf32>
    %112 = arith.divf %110, %111 : vector<8x1xf32>
    %cst_47 = arith.constant 9.99999996E-13 : f32
    %113 = vector.broadcast %cst_47 : f32 to vector<8x1xf32>
    %114 = arith.addf %112, %113 : vector<8x1xf32>
    %115 = math.rsqrt %114 : vector<8x1xf32>
    %116 = vector.broadcast %115 : vector<8x1xf32> to vector<8x32xf32>
    %117 = arith.mulf %107, %116 : vector<8x32xf32>
    %c0_48 = arith.constant 0 : index
    %c0_49 = arith.constant 0 : index
    %118 = vector.load %arg13[%c0_48, %c0_49] : memref<1x32xf32, #tpu.memory_space<vmem>>, vector<1x32xf32>
    %119 = vector.broadcast %118 : vector<1x32xf32> to vector<8x32xf32>
    %120 = arith.mulf %117, %119 : vector<8x32xf32>
    %c0_50 = arith.constant 0 : index
    %c0_51 = arith.constant 0 : index
    %121 = vector.load %arg14[%c0_50, %c0_51] : memref<1x32xf32, #tpu.memory_space<vmem>>, vector<1x32xf32>
    %122 = vector.broadcast %121 : vector<1x32xf32> to vector<8x32xf32>
    %123 = arith.addf %120, %122 : vector<8x32xf32>
    %124 = arith.truncf %123 : vector<8x32xf32> to vector<8x32xbf16>
    %c0_52 = arith.constant 0 : index
    %c0_53 = arith.constant 0 : index
    %125 = vector.load %arg15[%c0_52, %c0_53] : memref<32x64xbf16, #tpu.memory_space<vmem>>, vector<32x64xbf16>
    %cst_54 = arith.constant dense<0.000000e+00> : vector<8x64xf32>
    %126 = tpu.matmul %124, %125, %cst_54 {dimension_numbers = #tpu.dot_dimension_numbers<[1], [0], [0], [1], [0, 0, 1, 1], [], []>} : vector<8x32xbf16>, vector<32x64xbf16>, vector<8x64xf32> -> vector<8x64xf32>
    %c0_55 = arith.constant 0 : index
    %c0_56 = arith.constant 0 : index
    %127 = vector.load %arg16[%c0_55, %c0_56] : memref<1x64xf32, #tpu.memory_space<vmem>>, vector<1x64xf32>
    %128 = vector.broadcast %127 : vector<1x64xf32> to vector<8x64xf32>
    %129 = arith.addf %126, %128 : vector<8x64xf32>
    %130 = arith.mulf %129, %129 : vector<8x64xf32>
    %131 = arith.mulf %129, %130 : vector<8x64xf32>
    %cst_57 = arith.constant 4.471500e-02 : f32
    %132 = vector.broadcast %cst_57 : f32 to vector<8x64xf32>
    %133 = arith.mulf %132, %131 : vector<8x64xf32>
    %134 = arith.addf %129, %133 : vector<8x64xf32>
    %cst_58 = arith.constant 0.797884583 : f32
    %135 = vector.broadcast %cst_58 : f32 to vector<8x64xf32>
    %136 = arith.mulf %135, %134 : vector<8x64xf32>
    %137 = math.tanh %136 : vector<8x64xf32>
    %cst_59 = arith.constant 1.000000e+00 : f32
    %138 = vector.broadcast %cst_59 : f32 to vector<8x64xf32>
    %139 = arith.addf %138, %137 : vector<8x64xf32>
    %cst_60 = arith.constant 5.000000e-01 : f32
    %140 = vector.broadcast %cst_60 : f32 to vector<8x64xf32>
    %141 = arith.mulf %140, %139 : vector<8x64xf32>
    %142 = arith.mulf %129, %141 : vector<8x64xf32>
    %143 = arith.truncf %142 : vector<8x64xf32> to vector<8x64xbf16>
    %c0_61 = arith.constant 0 : index
    %c0_62 = arith.constant 0 : index
    %144 = vector.load %arg17[%c0_61, %c0_62] : memref<64x32xbf16, #tpu.memory_space<vmem>>, vector<64x32xbf16>
    %cst_63 = arith.constant dense<0.000000e+00> : vector<8x32xf32>
    %145 = tpu.matmul %143, %144, %cst_63 {dimension_numbers = #tpu.dot_dimension_numbers<[1], [0], [0], [1], [0, 0, 1, 1], [], []>} : vector<8x64xbf16>, vector<64x32xbf16>, vector<8x32xf32> -> vector<8x32xf32>
    %c0_64 = arith.constant 0 : index
    %c0_65 = arith.constant 0 : index
    %146 = vector.load %arg18[%c0_64, %c0_65] : memref<1x32xf32, #tpu.memory_space<vmem>>, vector<1x32xf32>
    %147 = vector.broadcast %146 : vector<1x32xf32> to vector<8x32xf32>
    %148 = arith.addf %145, %147 : vector<8x32xf32>
    %149 = arith.addf %148, %123 : vector<8x32xf32>
    %cst_66 = arith.constant dense<0.000000e+00> : vector<8xf32>
    %150 = vector.multi_reduction <add>, %149, %cst_66 [1] : vector<8x32xf32> to vector<8xf32>
    %151 = vector.shape_cast %150 : vector<8xf32> to vector<8x1xf32>
    %cst_67 = arith.constant 3.200000e+01 : f32
    %152 = vector.broadcast %cst_67 : f32 to vector<8x1xf32>
    %153 = arith.divf %151, %152 : vector<8x1xf32>
    %154 = vector.broadcast %153 : vector<8x1xf32> to vector<8x32xf32>
    %155 = arith.subf %149, %154 : vector<8x32xf32>
    %156 = arith.mulf %155, %155 : vector<8x32xf32>
    %cst_68 = arith.constant dense<0.000000e+00> : vector<8xf32>
    %157 = vector.multi_reduction <add>, %156, %cst_68 [1] : vector<8x32xf32> to vector<8xf32>
    %158 = vector.shape_cast %157 : vector<8xf32> to vector<8x1xf32>
    %cst_69 = arith.constant 3.200000e+01 : f32
    %159 = vector.broadcast %cst_69 : f32 to vector<8x1xf32>
    %160 = arith.divf %158, %159 : vector<8x1xf32>
    %cst_70 = arith.constant 9.99999996E-13 : f32
    %161 = vector.broadcast %cst_70 : f32 to vector<8x1xf32>
    %162 = arith.addf %160, %161 : vector<8x1xf32>
    %163 = math.rsqrt %162 : vector<8x1xf32>
    %164 = vector.broadcast %163 : vector<8x1xf32> to vector<8x32xf32>
    %165 = arith.mulf %155, %164 : vector<8x32xf32>
    %c0_71 = arith.constant 0 : index
    %c0_72 = arith.constant 0 : index
    %166 = vector.load %arg19[%c0_71, %c0_72] : memref<1x32xf32, #tpu.memory_space<vmem>>, vector<1x32xf32>
    %167 = vector.broadcast %166 : vector<1x32xf32> to vector<8x32xf32>
    %168 = arith.mulf %165, %167 : vector<8x32xf32>
    %c0_73 = arith.constant 0 : index
    %c0_74 = arith.constant 0 : index
    %169 = vector.load %arg20[%c0_73, %c0_74] : memref<1x32xf32, #tpu.memory_space<vmem>>, vector<1x32xf32>
    %170 = vector.broadcast %169 : vector<1x32xf32> to vector<8x32xf32>
    %171 = arith.addf %168, %170 : vector<8x32xf32>
    %172 = arith.truncf %171 : vector<8x32xf32> to vector<8x32xbf16>
    %c0_75 = arith.constant 0 : index
    %c0_76 = arith.constant 0 : index
    %173 = vector.load %arg21[%c0_75, %c0_76] : memref<32x128xbf16, #tpu.memory_space<vmem>>, vector<32x128xbf16>
    %cst_77 = arith.constant dense<0.000000e+00> : vector<8x128xf32>
    %174 = tpu.matmul %172, %173, %cst_77 {dimension_numbers = #tpu.dot_dimension_numbers<[1], [0], [0], [1], [0, 0, 1, 1], [], []>} : vector<8x32xbf16>, vector<32x128xbf16>, vector<8x128xf32> -> vector<8x128xf32>
    %c0_78 = arith.constant 0 : index
    %c0_79 = arith.constant 0 : index
    %175 = vector.load %arg22[%c0_78, %c0_79] : memref<1x128xf32, #tpu.memory_space<vmem>>, vector<1x128xf32>
    %176 = vector.broadcast %175 : vector<1x128xf32> to vector<8x128xf32>
    %177 = arith.addf %174, %176 : vector<8x128xf32>
    %c0_80 = arith.constant 0 : index
    %c0_81 = arith.constant 0 : index
    %178 = vector.load %arg23[%c0_80, %c0_81] : memref<8x128xf32, #tpu.memory_space<vmem>>, vector<8x128xf32>
    tpu.vector_store %arg23[%c0_80, %c0_81], %177 {strides = array<i32>} : memref<8x128xf32, #tpu.memory_space<vmem>>, vector<8x128xf32>,
    return
  }
  func.func @transform_0(%arg0: i32) -> (i32, i32) {
    %c0_i32 = arith.constant 0 : i32
    %c0_i32_0 = arith.constant 0 : i32
    return %arg0, %c0_i32 : i32, i32
  }
  func.func @transform_1(%arg0: i32) -> (i32, i32) {
    %c0_i32 = arith.constant 0 : i32
    %c0_i32_0 = arith.constant 0 : i32
    return %arg0, %c0_i32 : i32, i32
  }
  func.func @transform_2(%arg0: i32) -> (i32, i32, i32) {
    %c0_i32 = arith.constant 0 : i32
    %c0_i32_0 = arith.constant 0 : i32
    %c0_i32_1 = arith.constant 0 : i32
    return %arg0, %c0_i32, %c0_i32_0 : i32, i32, i32
  }
  func.func @transform_3(%arg0: i32) -> (i32, i32) {
    %c0_i32 = arith.constant 0 : i32
    %c0_i32_0 = arith.constant 0 : i32
    %c0_i32_1 = arith.constant 0 : i32
    return %c0_i32, %c0_i32_0 : i32, i32
  }
  func.func @transform_4(%arg0: i32) -> (i32, i32) {
    %c0_i32 = arith.constant 0 : i32
    %c0_i32_0 = arith.constant 0 : i32
    %c0_i32_1 = arith.constant 0 : i32
    return %c0_i32, %c0_i32_0 : i32, i32
  }
  func.func @transform_5(%arg0: i32) -> (i32, i32) {
    %c0_i32 = arith.constant 0 : i32
    %c0_i32_0 = arith.constant 0 : i32
    %c0_i32_1 = arith.constant 0 : i32
    return %c0_i32, %c0_i32_0 : i32, i32
  }
  func.func @transform_6(%arg0: i32) -> (i32, i32) {
    %c0_i32 = arith.constant 0 : i32
    %c0_i32_0 = arith.constant 0 : i32
    %c0_i32_1 = arith.constant 0 : i32
    return %c0_i32, %c0_i32_0 : i32, i32
  }
  func.func @transform_7(%arg0: i32) -> (i32, i32) {
    %c0_i32 = arith.constant 0 : i32
    %c0_i32_0 = arith.constant 0 : i32
    %c0_i32_1 = arith.constant 0 : i32
    return %c0_i32, %c0_i32_0 : i32, i32
  }
  func.func @transform_8(%arg0: i32) -> (i32, i32) {
    %c0_i32 = arith.constant 0 : i32
    %c0_i32_0 = arith.constant 0 : i32
    %c0_i32_1 = arith.constant 0 : i32
    return %c0_i32, %c0_i32_0 : i32, i32
  }
  func.func @transform_9(%arg0: i32) -> (i32, i32) {
    %c0_i32 = arith.constant 0 : i32
    %c0_i32_0 = arith.constant 0 : i32
    %c0_i32_1 = arith.constant 0 : i32
    return %c0_i32, %c0_i32_0 : i32, i32
  }
  func.func @transform_10(%arg0: i32) -> (i32, i32) {
    %c0_i32 = arith.constant 0 : i32
    %c0_i32_0 = arith.constant 0 : i32
    %c0_i32_1 = arith.constant 0 : i32
    return %c0_i32, %c0_i32_0 : i32, i32
  }
  func.func @transform_11(%arg0: i32) -> (i32, i32) {
    %c0_i32 = arith.constant 0 : i32
    %c0_i32_0 = arith.constant 0 : i32
    %c0_i32_1 = arith.constant 0 : i32
    return %c0_i32, %c0_i32_0 : i32, i32
  }
  func.func @transform_12(%arg0: i32) -> (i32, i32) {
    %c0_i32 = arith.constant 0 : i32
    %c0_i32_0 = arith.constant 0 : i32
    %c0_i32_1 = arith.constant 0 : i32
    return %c0_i32, %c0_i32_0 : i32, i32
  }
  func.func @transform_13(%arg0: i32) -> (i32, i32) {
    %c0_i32 = arith.constant 0 : i32
    %c0_i32_0 = arith.constant 0 : i32
    %c0_i32_1 = arith.constant 0 : i32
    return %c0_i32, %c0_i32_0 : i32, i32
  }
  func.func @transform_14(%arg0: i32) -> (i32, i32) {
    %c0_i32 = arith.constant 0 : i32
    %c0_i32_0 = arith.constant 0 : i32
    %c0_i32_1 = arith.constant 0 : i32
    return %c0_i32, %c0_i32_0 : i32, i32
  }
  func.func @transform_15(%arg0: i32) -> (i32, i32) {
    %c0_i32 = arith.constant 0 : i32
    %c0_i32_0 = arith.constant 0 : i32
    %c0_i32_1 = arith.constant 0 : i32
    return %c0_i32, %c0_i32_0 : i32, i32
  }
  func.func @transform_16(%arg0: i32) -> (i32, i32) {
    %c0_i32 = arith.constant 0 : i32
    %c0_i32_0 = arith.constant 0 : i32
    %c0_i32_1 = arith.constant 0 : i32
    return %c0_i32, %c0_i32_0 : i32, i32
  }
  func.func @transform_17(%arg0: i32) -> (i32, i32) {
    %c0_i32 = arith.constant 0 : i32
    %c0_i32_0 = arith.constant 0 : i32
    %c0_i32_1 = arith.constant 0 : i32
    return %c0_i32, %c0_i32_0 : i32, i32
  }
  func.func @transform_18(%arg0: i32) -> (i32, i32) {
    %c0_i32 = arith.constant 0 : i32
    %c0_i32_0 = arith.constant 0 : i32
    %c0_i32_1 = arith.constant 0 : i32
    return %c0_i32, %c0_i32_0 : i32, i32
  }
  func.func @transform_19(%arg0: i32) -> (i32, i32) {
    %c0_i32 = arith.constant 0 : i32
    %c0_i32_0 = arith.constant 0 : i32
    %c0_i32_1 = arith.constant 0 : i32
    return %c0_i32, %c0_i32_0 : i32, i32
  }
  func.func @transform_20(%arg0: i32) -> (i32, i32) {
    %c0_i32 = arith.constant 0 : i32
    %c0_i32_0 = arith.constant 0 : i32
    %c0_i32_1 = arith.constant 0 : i32
    return %c0_i32, %c0_i32_0 : i32, i32
  }
  func.func @transform_21(%arg0: i32) -> (i32, i32) {
    %c0_i32 = arith.constant 0 : i32
    %c0_i32_0 = arith.constant 0 : i32
    %c0_i32_1 = arith.constant 0 : i32
    return %c0_i32, %c0_i32_0 : i32, i32
  }
  func.func @transform_22(%arg0: i32) -> (i32, i32) {
    %c0_i32 = arith.constant 0 : i32
    %c0_i32_0 = arith.constant 0 : i32
    return %arg0, %c0_i32 : i32, i32
  }
}

</mosaic_0001>

<bundles_post_ra>
// kernel: _forward.1
= control target key start
LH: loop header
LB: loop body
LE: loop exit
PB: predicated region body
PF: predicated region fallthrough
CT: control target
= control target key end

     0   :  { %s2579_s0 = inlined_call_operand.vmem [shape: s32[16,1], index: 0, kind: input, shape index: {}]   ;;  %s2580_s1 = inlined_call_operand.vmem [shape: s32[16,1], index: 1, kind: input, shape index: {}]   ;;  %s2581_s2 = inlined_call_operand.hbm [shape: s32[2,1,8], index: 2, kind: input, shape index: {}]   ;;  %s2582_s3 = inlined_call_operand.hbm [shape: f32[100,32], index: 3, kind: input, shape index: {}]   ;;  %s2583_s4 = inlined_call_operand.hbm [shape: f32[8,32], index: 4, kind: input, shape index: {}]   ;;  %s2584_s5 = inlined_call_operand.vmem [shape: f32[2,32], index: 5, kind: input, shape index: {}]   ;;  %s2585_s6 = inlined_call_operand.vmem [shape: f32[1,32], index: 6, kind: input, shape index: {}, may-alias: {6,12,18}]   ;;  %s2586_s7 = inlined_call_operand.vmem [shape: f32[1,32], index: 7, kind: input, shape index: {}, may-alias: {7,11,13,17,19}]   ;;  %s2587_s8 = inlined_call_operand.vmem [shape: bf16[32,96], index: 8, kind: input, shape index: {}]   ;;  %s2588_s9 = inlined_call_operand.vmem [shape: f32[1,96], index: 9, kind: input, shape index: {}]   ;;  %s2589_s10 = inlined_call_operand.vmem [shape: bf16[32,32], index: 10, kind: input, shape index: {}]   ;;  %s2590_s11 = inlined_call_operand.vmem [shape: f32[1,32], index: 11, kind: input, shape index: {}, may-alias: {7,11,13,17,19}]   ;;  %s2591_s12 = inlined_call_operand.vmem [shape: f32[1,32], index: 12, kind: input, shape index: {}, may-alias: {6,12,18}]   ;;  %s2592_s13 = inlined_call_operand.vmem [shape: f32[1,32], index: 13, kind: input, shape index: {}, may-alias: {7,11,13,17,19}]   ;;  %s2593_s14 = inlined_call_operand.vmem [shape: bf16[32,64], index: 14, kind: input, shape index: {}]   ;;  %s2594_s15 = inlined_call_operand.vmem [shape: f32[1,64], index: 15, kind: input, shape index: {}]   ;;  %s2595_s16 = inlined_call_operand.vmem [shape: bf16[64,32], index: 16, kind: input, shape index: {}]   ;;  %s2596_s17 = inlined_call_operand.vmem [shape: f32[1,32], index: 17, kind: input, shape index: {}, may-alias: {7,11,13,17,19}]   ;;  %s2597_s18 = inlined_call_operand.vmem [shape: f32[1,32], index: 18, kind: input, shape index: {}, may-alias: {6,12,18}]   ;;  %s2598_s19 = inlined_call_operand.vmem [shape: f32[1,32], index: 19, kind: input, shape index: {}, may-alias: {7,11,13,17,19}]   ;;  %s2599_s20 = inlined_call_operand.vmem [shape: bf16[32,128], index: 20, kind: input, shape index: {}]   ;;  %s2600_s21 = inlined_call_operand.vmem [shape: f32[1,128], index: 21, kind: input, shape index: {}]   ;;  %s2601_s22 = inlined_call_operand.vmem [shape: f32[16,128], index: 22, kind: output, shape index: {}]  }
   0x1   :  { %2611 = sst [smem:[#allocation9_spill]] %s2579_s0 }
   0x2   :  { %2612 = sst [smem:[#allocation10_spill]] %s2580_s1 }
   0x3   :  { %2613 = sst [smem:[#allocation11_spill]] %s2581_s2 }
   0x4   :  { %2614 = sst [smem:[#allocation12_spill]] %s2582_s3 }
   0x5   :  { %2615 = sst [smem:[#allocation13_spill]] %s2583_s4 }
   0x6   :  { %2616 = sst [smem:[#allocation14_spill]] %s2584_s5 }
   0x7   :  { %2617 = sst [smem:[#allocation15_spill]] %s2585_s6 }
   0x8   :  { %2618 = sst [smem:[#allocation16_spill]] %s2594_s15 }
   0x9   :  { %2619 = sst [smem:[#allocation17_spill]] %s2596_s17 }
   0xa   :  { %2620 = sst [smem:[#allocation18_spill]] %s2597_s18 }
   0xb   :  { %2621 = sst [smem:[#allocation19_spill]] %s2598_s19 }
   0xc   :  { %2622 = sst [smem:[#allocation20_spill]] %s2599_s20 }
   0xd   :  { %2623 = sst [smem:[#allocation21_spill]] %s2600_s21 }
   0xe   :  { %2624 = sst [smem:[#allocation22_spill]] %s2601_s22 }
   0xf   :  { %27 = vsyncpa [#allocation3], 0 }
  0x10   :  { %29 = vsyncpa [#allocation3 + $0x1], 0 }
  0x11   :  { %30 = vsyncpa [#allocation5], 0  ;;  %s2241_s3 = smov 0   ;;  %s2243_s28 = smov 0  }
  0x12   :  { %s2245_s29 = smov 0   ;;  %s2247_s30 = smov 0  }
  0x13 LB: > { %s2260_s4 = sadd.s32 4294967295, %s2108_s30   ;;  %p108_p0 = scmp.ne.s32.totalorder %s2100_s28, %s2096_s3  ;;  %s2108_s30 = sphi %s2247_s30, %s2651_s30   ;;  %s2104_s29 = sphi %s2245_s29, %s2650_s29   ;;  %s2100_s28 = sphi %s2243_s28, %s2649_s28   ;;  %s2096_s3 = sphi %s2241_s3, %s2648_s3  }
  0x14   : > { %p2606_p1 = scmp.eq.s32.totalorder %s2260_s4, 0  ;;  %p1678_p2 = scmp.ge.s32.totalorder %s2108_s30, 1 }
  0x15   : > { %p544_p3 = scmp.lt.s32.totalorder %s2108_s30, 3  ;;  %s2110_s1 = smov [#allocation4]  }
  0x16   : > { %p2268_p4 = por %p2606_p1, %p108_p0  ;;  %s556_s5 = sshll.u32 %s2110_s1, 4  ;;  %s557_s5 = int_to_ptr.vmem [resolvable:$true] %s556_s5 }
  0x17   : > { %p2272_p5 = pnand %p1678_p2, %p544_p3  ;;  %s2111_s6 = smov [#allocation6]  }
  0x18   : > { %s2625_s0 = scalar_select %p2268_p4, 1, 0 }
  0x19   : > { %s2626_s23 = scalar_select %p2272_p5, 1, 0 }
  0x1a   : > { %p1892_p6 = pneg %p2272_p5  ;;  %s570_s25 = sshll.u32 %s2111_s6, 4  ;;  %s2284_s25 = int_to_ptr.vmem [resolvable:$true] %s570_s25 }
  0x1b   : > { %s2628_s27 = sld [smem:[#allocation12_spill]] }
  0x1c   : > { %p2280_p7 = pnand %p1892_p6, %p2606_p1 }
  0x1e   : > { %p1986_p9 = pneg %p2280_p7 }
  0x21   : > { %s1984_s3 = scalar_lea.hbm %s2628_s27, 1664 }
  0x22   : > { %p1985_p8 = scmp.ne.s32.totalorder %s2628_s27, %s1984_s3  ;;  %p1991_p12 = scmp.lt.u32.totalorder %s1984_s3, %s2628_s27 }
  0x24   : > { %p1987_p10 = pnand %p1986_p9, %p1985_p8 }
  0x26   : > { %p1988_p11 = pneg %p1987_p10 }
  0x28   : > { %p1993_p13 = pnand %p1991_p12, %p1988_p11 }
  0x2a   : > { %1996 = shalt.err (!%p1993_p13)
}
  0x2b   : > { %s1997_s6 = scalar_lea.vmem %s557_s5, 1664  ;;  %p2005_p6 = scmp.lt.s32.totalorder %s557_s5, %s557_s5 }
  0x2c   : > { %p1998_p0 = scmp.ne.s32.totalorder %s557_s5, %s1997_s6  ;;  %p2006_p1 = scmp.lt.s32.totalorder %s1997_s6, %s1997_s6 }
  0x2e   : > { %p2000_p2 = pnand %p1998_p0, %p1986_p9  ;;  %p2007_p4 = por %p2006_p1, %p2005_p6 }
  0x30   : > { %p2001_p3 = pneg %p2000_p2 }
  0x32   : > { %p2008_p5 = pnand %p2007_p4, %p2001_p3 }
  0x34   : > { %2011 = shalt.err (!%p2008_p5)
}
  0x35   : > { %s2112_s22 = smov 128   ;;  %s2113_s26 = smov 8  }
  0x36   : > { %1895 = dma.hbm_to_vmem [thread:$0]  (!%p2280_p7), %s2628_s27, 1664, %s557_s5, [#allocation5], %s2112_s22, %s2112_s22, %s2113_s26  }
  0x37   : > { %s2629_s1 = sld [smem:[#allocation13_spill]] }
  0x3d   : > { %s2012_s18 = scalar_lea.hbm %s2629_s1, 128 }
  0x3e   : > { %p2013_p8 = scmp.ne.s32.totalorder %s2629_s1, %s2012_s18  ;;  %p2019_p5 = scmp.lt.u32.totalorder %s2012_s18, %s2629_s1 }
  0x40   : > { %p2015_p1 = pnand %p2013_p8, %p1986_p9 }
  0x42   : > { %p2016_p4 = pneg %p2015_p1 }
  0x44   : > { %p2021_p10 = pnand %p2019_p5, %p2016_p4 }
  0x46   : > { %2024 = shalt.err (!%p2021_p10)
}
  0x47   : > { %s2025_s5 = scalar_lea.vmem %s2284_s25, 128  ;;  %p2033_p0 = scmp.lt.s32.totalorder %s2284_s25, %s2284_s25 }
  0x48   : > { %p2026_p11 = scmp.ne.s32.totalorder %s2284_s25, %s2025_s5  ;;  %p2034_p2 = scmp.lt.s32.totalorder %s2025_s5, %s2025_s5 }
  0x4a   : > { %p2028_p12 = pnand %p2026_p11, %p1986_p9  ;;  %p2035_p3 = por %p2034_p2, %p2033_p0 }
  0x4c   : > { %p2029_p13 = pneg %p2028_p12 }
  0x4e   : > { %p2036_p6 = pnand %p2035_p3, %p2029_p13 }
  0x50   : > { %2039 = shalt.err (!%p2036_p6)
}
  0x51   : > { %1898 = dma.hbm_to_vmem [thread:$0]  (!%p2280_p7), %s2629_s1, 128, %s2284_s25, [#allocation5]  }
  0x52   : > { %s2334_s18 = sadd.s32 1, %s2108_s30   ;;  %s95_s20 = sadd.s32 1, %s2104_s29 }
  0x53   : > { %s92_s24 = ssub.s32 %s2108_s30, %s2334_s18  ;;  %p102_p9 = scmp.ne.s32.totalorder %s2104_s29, %s2100_s28 }
  0x54   : > { %p93_p8 = scmp.eq.s32.totalorder %s92_s24, 0  ;;  %p103_p1 = scmp.eq.s32.totalorder %s2108_s30, 0 }
  0x55   : > { %p1905_p4 = scmp.lt.s32.totalorder %s2108_s30, 2  ;;  %s646_s22 = sand.u32 1, %s2104_s29  }
  0x56   : > { %s2345_s26 = scalar_select %p93_p8, %s2104_s29, %s95_s20  }
  0x57   : > { %p104_p5 = por %p103_p1, %p102_p9  ;;  %s1682_s19 = sshll.u32 %s2108_s30, 4 }
  0x58   : > { %s2630_s3 = sld [smem:[#allocation11_spill]]  ;;  %s649_s25 = scalar_lea.vmem [#allocation2], %s646_s22 }
  0x59   : > { %s656_s15 = sshll.u32 %s649_s25, 4  ;;  %p2355_p7 = pnand %p1905_p4, %p104_p5  ;;  %s2353_s15 = int_to_ptr.vmem [resolvable:$true] %s656_s15 }
  0x5a   : > { %s647_s30 = scalar_lea.sflag [#allocation3], %s646_s22 }
  0x5b   : > { %p2042_p11 = pneg %p2355_p7 }
  0x5e   : > { %s2631_s6 = smov %s2630_s3  ;;  %s2351_s5 = scalar_lea.hbm %s2630_s3, %s1682_s19 }
  0x5f   : > { %s2040_s20 = scalar_lea.hbm %s2351_s5, 16  ;;  %s2045_s21 = scalar_lea.hbm %s2631_s6, 32 }
  0x60   : > { %p2041_p10 = scmp.ne.s32.totalorder %s2351_s5, %s2040_s20  ;;  %p2046_p0 = scmp.lt.u32.totalorder %s2351_s5, %s2631_s6 }
  0x61   : > { %p2047_p2 = scmp.lt.u32.totalorder %s2045_s21, %s2040_s20  ;;  %p2049_p6 = scmp.lt.u32.totalorder %s2040_s20, %s2351_s5 }
  0x62   : > { %p2043_p12 = pnand %p2042_p11, %p2041_p10 }
  0x63   : > { %p2048_p3 = por %p2047_p2, %p2046_p0 }
  0x64   : > { %p2044_p13 = pneg %p2043_p12 }
  0x65   : > { %p2050_p9 = por %p2049_p6, %p2048_p3 }
  0x67   : > { %p2051_p8 = pnand %p2050_p9, %p2044_p13 }
  0x69   : > { %2054 = shalt.err (!%p2051_p8)
}
  0x6a   : > { %s2055_s22 = scalar_lea.vmem %s2353_s15, 16  ;;  %s2114_s25 = smov [#allocation2]  }
  0x6b   : > { %p2056_p1 = scmp.ne.s32.totalorder %s2353_s15, %s2055_s22  ;;  %s2060_s24 = sshll.u32 %s2114_s25, 4  ;;  %s2061_s24 = int_to_ptr.vmem [resolvable:$false] %s2060_s24 }
  0x6c   : > { %s2062_s19 = scalar_lea.vmem %s2061_s24, 32  ;;  %p2063_p10 = scmp.lt.s32.totalorder %s2353_s15, %s2061_s24 }
  0x6d   : > { %p2058_p4 = pnand %p2056_p1, %p2042_p11  ;;  %p2064_p12 = scmp.lt.s32.totalorder %s2062_s19, %s2055_s22 }
  0x6f   : > { %p2059_p5 = pneg %p2058_p4  ;;  %p2065_p0 = por %p2064_p12, %p2063_p10 }
  0x71   : > { %p2066_p2 = pnand %p2065_p0, %p2059_p5 }
  0x73   : > { %2069 = shalt.err (!%p2066_p2)
}
  0x74   : > { %1902 = dma.hbm_to_vmem [thread:$0]  (!%p2355_p7), %s2351_s5, 16, %s2353_s15, %s647_s30  }
  0x75   : > { %p2633_p13 = scmp.ne.s32.totalorder %s2626_s23, 0 }
  0x76   : > { %s667_s20 = sand.u32 (!%p2633_p13), 1, %s2100_s28   ;;  %p2634_p11 = scmp.ne.s32.totalorder (!%p2633_p13), %s2625_s0, 0 }
  0x77   : > { %665 = sbr.rel (%p2633_p13) target bundleno = 3531 (0xdcb), region = 108  ;;  %s668_s21 = scalar_lea.sflag (!%p2633_p13), [#allocation3], %s667_s20 }
  0x78   : > { %s2387_s2 = scalar_lea.vmem (!%p2633_p13), [#allocation2], %s667_s20 }
  0x7e   : > { %2087 = dma.done.wait (%p2634_p11), %s668_s21, 16  }
  0x7f   : > { %2089 = vsyncadd (%p2634_p11), %s668_s21, 4294967280  ;;  %p2635_p3 = scmp.eq.s32.totalorder %s2260_s4, 0 }
  0x81   : > { %2091 = dma.done.wait (%p2635_p3), [#allocation5], 1792   ;;  %p2636_p6 = pmov %p2635_p3 }
  0x82   : > { %p745_p7 = scmp.lt.s32.totalorder %s2260_s4, 1  ;;  %v2115_v0 = vmov 0   ;;  %v2116_v1 = vmov 0.0|0.0   ;;  %v2117_v2 = vmov 0.0   ;;  %s2637_s15 = sld [smem:[#allocation10_spill]]  ;;  %v767_v5 = vld [vmem:[#allocation4] sm:$0xff]  ;;  %v759_v25 = vlaneseq }
  0x83   : > { %2093 = vsyncadd (%p2636_p6), [#allocation5], 4294965504  ;;  %1955 = vset.pattern.permute.xlu0 %v2115_v0  ;;  %1864 = vmatprep.subr.bf16.mxu0 %v2116_v1  ;;  %s2638_s22 = sld [smem:[#allocation9_spill]]  ;;  %v768_v6 = vld [vmem:[#allocation4 + $0x8] sm:$0xff]  ;;  %v769_v7 = vld [vmem:[#allocation4 + $0x10] sm:$0xff]  ;;  %vm2118_vm1 = vmmov 0  }
  0x84   : > { %s2653_s4 = smov (!%p745_p7, %s2260_s4), 1  ;;  %1796 = vmatprep.subr.bf16.mxu1 %v2117_v2  ;;  %v770_v8 = vld [vmem:[#allocation4 + $0x18] sm:$0xff]  ;;  %v1865_v10 = vpack.c.bf16 %v768_v6, %v767_v5  ;;  %1793 = vmatprep.mubr.msk.f32.mxu0 %vm2118_vm1, %v2117_v2  ;;  %v771_v12 = vld [vmem:[#allocation4 + $0x20] sm:$0xff]  ;;  %v772_v13 = vld [vmem:[#allocation4 + $0x28] sm:$0xff]  ;;  %vm785_vm2 = vcmask 1043456   ;;  %v760_v26 = vand.u32 127, %v759_v25 }
  0x85   : > { %s2400_s23 = sshll.u32 %s2653_s4, 3  ;;  %1800 = vmatprep.mubr.msk.bf16.mxu1 %vm2118_vm1, %v2117_v2  ;;  %v1868_v11 = vpack.c.bf16 %v770_v8, %v769_v7  ;;  %v773_v14 = vld [vmem:[#allocation4 + $0x30] sm:$0xff]  ;;  %v774_v15 = vld [vmem:[#allocation4 + $0x38] sm:$0xff]  ;;  %v1871_v16 = vpack.c.bf16 %v772_v13, %v771_v12  ;;  %v775_v17 = vld [vmem:[#allocation4 + $0x40] sm:$0xff]  ;;  %vm781_vm3 = vcmask 818176   ;;  %s2639_s19 = sld [smem:[#allocation14_spill]] }
  0x86   : > { %1866 = vmatpush3.bf16.msra.mxu0 %v1865_v10  ;;  %v776_v18 = vld [vmem:[#allocation4 + $0x48] sm:$0xff]  ;;  %v1874_v19 = vpack.c.bf16 %v774_v15, %v773_v14  ;;  %v777_v21 = vld [vmem:[#allocation4 + $0x50] sm:$0xff]  ;;  %v778_v22 = vld [vmem:[#allocation4 + $0x58] sm:$0xff]  ;;  %vm878_vm6 = vcmask 261120   ;;  %s2119_s21 = smov 80   ;;  %s2120_s0 = smov 96  }
  0x87   : > { %1867 = vmatprep.subr.bf16.mxu0 %v2116_v1  ;;  %v1877_v20 = vpack.c.bf16 %v776_v18, %v775_v17  ;;  %v1880_v23 = vpack.c.bf16 %v778_v22, %v777_v21  ;;  %v779_v24 = vld [vmem:[#allocation4 + $0x60] sm:$0xf]  ;;  %v780_v30 = vld [vmem:[#allocation6] sm:$0xff]  ;;  %v1695_v52 = vld [vmem:[%s2586_s7] ss:$0 sm:$0xff]  ;;  %s2121_s5 = smov 112  }
  0x88   : > { %s752_s17 = scalar_lea.vmem %s2637_s15, %s2400_s23  ;;  %v1956_v44 = vld [vmem:[%s2587_s8] sm:$0xff]   ;;  %v1957_v45 = vld [vmem:[%s2587_s8 + $0x8] sm:$0xff]   ;;  %vm983_vm7 = vcmask 130048   ;;  %v1084_v6 = vshrl.u32 %v759_v25, 7  ;;  %v2122_v8 = vmov -1e+09  }
  0x89   : > { %s748_s25 = scalar_lea.vmem %s2638_s22, %s2400_s23  ;;  %v859_v3 = vld [vmem:[%s752_s17] sm:$0xff]  ;;  %1797 = vmatpush3.bf16.msra.mxu1 %v1956_v44  ;;  %s2640_s22 = sld [smem:[#allocation15_spill]]  ;;  %vm1090_vm9 = vcmask 64512   ;;  %vm1430_vm10 = vcmask 523264  }
  0x8a   : > { %v758_v4 = vld [vmem:[%s748_s25] sm:$0xff]  ;;  %vm860_vm0 = vcmp.eq.s32.totalorder %v859_v3, 0  ;;  %1869 = vmatpush3.bf16.msra.mxu0 %v1868_v11  ;;  %1798 = vmatprep.subr.bf16.mxu1 %v2117_v2  ;;  %v1085_v7 = vsub.s32 0, %v1084_v6  ;;  %s2124_s15 = smov 48   ;;  %s2125_s25 = smov 16  }
  0x8b   : > { %762 = vperm.xlu0 %1955, %v758_v4   ;;  %v863_v9 = vsel %vm860_vm0, 1, %v2115_v0  ;;  %1870 = vmatprep.subr.bf16.mxu0 %v2116_v1  ;;  %v1692_v31 = vld [vmem:[%s2639_s19] ss:$0 sm:$0xff]  ;;  %v1693_v32 = vld [vmem:[%s2639_s19 + $0x1] ss:$0 sm:$0xff]  ;;  %s2642_s3 = sld [smem:[#allocation17_spill]] }
  0x8c   : > { %v1696_v56 = vld [vmem:[%s2588_s9] ss:$0 sm:$0xff]  ;;  %s2643_s4 = sld [smem:[#allocation20_spill]]  ;;  %s2645_s17 = sld [smem:[#allocation19_spill]] }
  0x8d   : > { %1799 = vmatpush3.bf16.msra.mxu1 %v1957_v45  ;;  %v976_v5 = vld [vmem:[%s2387_s2] sm:$0x1]  ;;  %s2123_s2 = smov 64   ;;  %s2647_s20 = sld [smem:[#allocation22_spill]] }
  0x8e   : > { %1872 = vmatpush3.bf16.msra.mxu0 %v1871_v16  ;;  %1804 = vmatprep.subr.bf16.mxu1 %v2117_v2  ;;  %vm977_vm8 = vcmp.gt.s32.totalorder %v976_v5, 0 }
  0x8f   : > { %865 = vperm.xlu0 %1955, %v863_v9   ;;  %1873 = vmatprep.subr.bf16.mxu0 %v2116_v1  ;;  %v1694_v50 = vld [vmem:[%s2640_s22] ss:$0 sm:$0xff]  ;;  %v978_v9 = vsel %vm977_vm8, 0.0, %v2122_v8  ;;  %s2646_s22 = sld [smem:[#allocation21_spill]] }
  0x90   : > { %v1086_v10 = vrot.slane %v978_v9, %v1085_v7 }
  0x92   : > { %1875 = vmatpush3.bf16.msra.mxu0 %v1874_v19 }
  0x93   : > { %1876 = vmatprep.subr.bf16.mxu0 %v2116_v1  ;;  %s756_s1 = scalar_lea.vmem %s2647_s20, %s2400_s23 }
  0x96   : > { %1878 = vmatpush3.bf16.msra.mxu0 %v1877_v20 }
  0x97   : > { %1879 = vmatprep.subr.bf16.mxu0 %v2116_v1 }
  0x9a   : > { %1881 = vmatpush3.bf16.msra.mxu0 %v1880_v23 }
  0x9b   : > { %1791 = vmatprep.subr.mxu0 %v2117_v2 }
  0x9e   : > { %1792 = vmatpush3.msk.msra.mxu0 %vm785_vm2, %v779_v24 }
  0x9f   : > { %1816 = vmatprep.subr.bf16.mxu0 %v2117_v2 }
 0x10a   : > { %v763_v27 = vpop.permute.xlu0 %762 }
 0x10b   : > { %vm764_vm4 = vcmp.eq.s32.totalorder %v763_v27, %v760_v26 }
 0x10c   : > { %v1689_v28 = vsel %vm764_vm4, 1.0, %v2117_v2 }
 0x10d   : > { %1794 = vmatmul.mubr.msk.f32.vlgmr.msra.gmra.mrb[0].mxu0 %vm781_vm3, %v1689_v28 }
 0x10e   : > { %1818 = vmatprep.mubr.msk.bf16.mxu0 %vm2118_vm1, %v2117_v2  ;;  %v866_v29 = vpop.permute.xlu0 %865 }
 0x10f   : > { %vm867_vm5 = vcmp.eq.s32.totalorder %v866_v29, 1 }
 0x110   : > { %v876_v36 = vsel %vm867_vm5, %v1692_v31, %v1693_v32 }
 0x1e0   : > { %v855_v33 = vpop.f32.mrb[0].mxu0 }
 0x1e1   : > { %v856_v34 = vadd.f32 %v855_v33, %v780_v30  ;;  %v1795_v35 = vpop.f32.mrb[1].mxu0 }
 0x1e3   : > { %v877_v37 = vadd.f32 %v876_v36, %v856_v34 }
 0x1e5   : > { %v879_v38 = vsel %vm878_vm6, %v877_v37, 0.0 }
 0x1e6   : > { %880 = vadd.xlane.f32.xlu1 %v879_v38 }
 0x273   : > { %v881_v39 = vpop.xlane.xlu1 %880 }
 0x274   : > { %v883_v40 = vmul.f32 0.03125, %v881_v39 }
 0x276   : > { %v884_v41 = vsub.f32 %v877_v37, %v883_v40 }
 0x278   : > { %v885_v42 = vmul.f32 %v884_v41, %v884_v41 }
 0x27a   : > { %v886_v43 = vsel %vm878_vm6, %v885_v42, 0.0 }
 0x27b   : > { %887 = vadd.xlane.f32.xlu1 %v886_v43 }
 0x308   : > { %v888_v46 = vpop.xlane.xlu1 %887 }
 0x309   : > { %v889_v47 = vmul.f32 0.03125, %v888_v46 }
 0x30b   : > { %v890_v48 = vadd.f32 1e-12, %v889_v47  ;;  %v1958_v47 = vld [vmem:[%s2589_s10] sm:$0xff]  }
 0x30d   : > { %1968 = vrsqrt.f32 %v890_v48  ;;  %v1959_v48 = vld [vmem:[%s2589_s10 + $0x8] sm:$0xff]  }
 0x317   : > { %v1969_v49 = vpop.eup %1968 }
 0x318   : > { %v892_v51 = vmul.f32 %v1969_v49, %v884_v41 }
 0x31a   : > { %v900_v53 = vmul.f32 %v1694_v50, %v892_v51 }
 0x31c   : > { %v2443_v54 = vadd.f32 %v1695_v52, %v900_v53 }
 0x31e   : > { %v909_v55 = vpack.c.bf16 %v2443_v54, %v2443_v54 }
 0x320   : > { %1801 = vmatmul.mubr.msk.bf16.vlgmr.msra.gmra.mrb[0].mxu1 %vm878_vm6, %v909_v55 }
 0x321   : > { %1806 = vmatprep.mubr.msk.bf16.mxu1 %vm2118_vm1, %v2117_v2 }
 0x3f3   : > { %v970_v57 = vpop.f32.mrb[0].mxu1 }
 0x3f4   : > { %v971_v58 = vadd.f32 %v1696_v56, %v970_v57  ;;  %v1802_v59 = vpop.f32.mrb[1].mxu1 }
 0x3f5   : > { %v973_v60 = vpop.f32.mrb[2].mxu1 }
 0x3f6   : > { %v2453_v61 = vpack.c.bf16 %v971_v58, %v971_v58  ;;  %v1803_v62 = vpop.f32.mrb[3].mxu1 }
 0x3f8   : > { %1033 = vrot.lane.b32.xlu1 %v2453_v61, %s2119_s21  ;;  %981 = vrot.lane.b32.xlu0 %v2453_v61, %s2120_s0 }
 0x3fc   : > { %1031 = vrot.lane.b32.xlu0 %v2453_v61, %s2121_s5  ;;  %s2644_s5 = sld [smem:[#allocation18_spill]] }
 0x46a   : > { %v982_v63 = vpop.permute.xlu0 %981  ;;  %v1034_v1 = vpop.permute.xlu1 %1033 }
 0x46b   : > { %v988_v0 = vsel %vm983_vm7, %v982_v63, 0  ;;  %v1039_v3 = vsel %vm983_vm7, %v1034_v1, 0 }
 0x46c   : > { %1805 = vmatpush3.bf16.xpose.msra.mxu1 %v988_v0 }
 0x46d   : > { %1810 = vmatprep.subr.bf16.mxu1 %v2117_v2 }
 0x46e   : > { %v1032_v4 = vpop.permute.xlu0 %1031 }
 0x473   : > { %1807 = vmatmul.mubr.msk.bf16.vlgmr.msra.gmra.mrb[4].mxu1 %vm983_vm7, %v2453_v61 }
 0x474   : > { %1811 = vmatpush3.bf16.xpose.msra.mxu1 %v1039_v3  ;;  %1812 = vmatprep.mubr.msk.bf16.mxu1 %vm2118_vm1, %v2117_v2 }
 0x475   : > { %1822 = vmatprep.subr.bf16.mxu1 %v2117_v2 }
 0x47b   : > { %1813 = vmatmul.mubr.msk.bf16.vlgmr.msra.gmra.mrb[8].mxu1 %vm983_vm7, %v1032_v4 }
 0x47c   : > { %1824 = vmatprep.mubr.msk.bf16.mxu1 %vm2118_vm1, %v2117_v2 }
 0x546   : > { %v1024_v11 = vpop.f32.mrb[4].mxu1 }
 0x547   : > { %v1030_v12 = vmul.f32 0.25, %v1024_v11  ;;  %v1808_v13 = vpop.f32.mrb[5].mxu1  ;;  %v1960_v11 = vld [vmem:[%s2593_s14] sm:$0xff]  }
 0x548   : > { %v1027_v14 = vpop.f32.mrb[6].mxu1 }
 0x549   : > { %v1809_v15 = vpop.f32.mrb[7].mxu1  ;;  %v1088_v16 = vadd.f32 %v1086_v10, %v1030_v12 }
 0x54b   : > { %v1091_v17 = vsel %vm1090_vm9, %v1088_v16, -inf }
 0x54c   : > { %1092 = vmax.xlane.f32.xlu0 %v1091_v17 }
 0x54e   : > { %v1075_v18 = vpop.f32.mrb[8].mxu1 }
 0x54f   : > { %v1081_v19 = vmul.f32 0.25, %v1075_v18  ;;  %v1814_v20 = vpop.f32.mrb[9].mxu1  ;;  %v1709_v18 = vld [vmem:[%s2592_s13] ss:$0 sm:$0xff] }
 0x550   : > { %v1078_v21 = vpop.f32.mrb[10].mxu1 }
 0x551   : > { %v1815_v22 = vpop.f32.mrb[11].mxu1  ;;  %v1089_v23 = vadd.f32 %v1086_v10, %v1081_v19 }
 0x552   : > { %v1962_v22 = vld [vmem:[%s2595_s16] sm:$0xff]  }
 0x553   : > { %v1094_v24 = vsel %vm1090_vm9, %v1089_v23, -inf }
 0x554   : > { %1095 = vmax.xlane.f32.xlu1 %v1094_v24  ;;  %v1964_v24 = vld [vmem:[%s2595_s16 + $0x10] sm:$0xff]  }
 0x565   : > { %1114 = vrot.lane.b32.xlu1 %v2453_v61, %s2123_s2 }
 0x5d9   : > { %v1093_v25 = vpop.xlane.xlu0 %1092 }
 0x5da   : > { %v1097_v26 = vsub.f32 %v1088_v16, %v1093_v25  ;;  %v1708_v16 = vld [vmem:[%s2591_s12] ss:$0 sm:$0xff]  ;;  %v1965_v25 = vld [vmem:[%s2595_s16 + $0x18] sm:$0xff]  }
 0x5dc   : > { %v1099_v27 = vmul.f32 1.442695, %v1097_v26 }
 0x5de   : > { %1970 = vpow2.f32 %v1099_v27 }
 0x5e1   : > { %v1096_v28 = vpop.xlane.xlu1 %1095 }
 0x5e2   : > { %v1098_v29 = vsub.f32 %v1089_v23, %v1096_v28  ;;  %v1963_v23 = vld [vmem:[%s2595_s16 + $0x8] sm:$0xff]  }
 0x5e4   : > { %v1101_v30 = vmul.f32 1.442695, %v1098_v29 }
 0x5e5   : > { %v1115_v31 = vpop.permute.xlu1 %1114 }
 0x5e6   : > { %1972 = vpow2.f32 %v1101_v30  ;;  %v1120_v32 = vsel %vm785_vm2, %v1115_v31, 0 }
 0x5e7   : > { %1817 = vmatpush3.bf16.msra.mxu0 %v1120_v32 }
 0x5e8   : > { %v1971_v33 = vpop.eup %1970  ;;  %1828 = vmatprep.subr.bf16.mxu0 %v2117_v2 }
 0x5e9   : > { %v1103_v34 = vsel %vm1090_vm9, %v1971_v33, 0.0 }
 0x5ea   : > { %1104 = vadd.xlane.f32.xlu0 %v1103_v34 }
 0x5f0   : > { %v1973_v35 = vpop.eup %1972 }
 0x5f1   : > { %v1106_v36 = vsel %vm1090_vm9, %v1973_v35, 0.0 }
 0x5f2   : > { %1107 = vadd.xlane.f32.xlu0 %v1106_v36 }
 0x608   : > { %1164 = vrot.lane.b32.xlu0 %v2453_v61, %s2124_s15  ;;  %v1704_v61 = vld [vmem:[%s2590_s11] ss:$0 sm:$0xff]  ;;  %s2641_s15 = sld [smem:[#allocation16_spill]] }
 0x60e   : > { %v1710_v26 = vld [vmem:[%s2641_s15] ss:$0 sm:$0xff] }
 0x677   : > { %v1105_v37 = vpop.xlane.xlu0 %1104 }
 0x678   : > { %1974 = vrcp.f32 %v1105_v37 }
 0x67f   : > { %v1108_v38 = vpop.xlane.xlu0 %1107 }
 0x680   : > { %1976 = vrcp.f32 %v1108_v38 }
 0x682   : > { %v1975_v41 = vpop.eup %1974 }
 0x683   : > { %v1165_v39 = vpop.permute.xlu0 %1164  ;;  %v1111_v43 = vmul.f32 %v1975_v41, %v1971_v33 }
 0x684   : > { %v1170_v40 = vsel %vm785_vm2, %v1165_v39, 0 }
 0x685   : > { %1823 = vmatpush3.bf16.msra.mxu1 %v1170_v40 }
 0x686   : > { %1836 = vmatprep.subr.bf16.mxu1 %v2117_v2 }
 0x68a   : > { %v1977_v42 = vpop.eup %1976 }
 0x68b   : > { %v1112_v44 = vmul.f32 %v1977_v42, %v1973_v35  ;;  %v1714_v42 = vld [vmem:[%s2642_s3] ss:$0 sm:$0xff] }
 0x68d   : > { %v1113_v45 = vpack.c.bf16 %v1112_v44, %v1111_v43 }
 0x68f   : > { %1819 = vmatmul.mubr.msk.bf16.vlgmr.msra.gmra.mrb[4].mxu0 %vm1090_vm9, %v1113_v45  ;;  %v1163_v46 = vrot.slane %v1113_v45, 4 }
 0x690   : > { %1832 = vmatprep.mubr.msk.bf16.mxu0 %vm2118_vm1, %v2117_v2  ;;  %1829 = vmatpush3.bf16.msra.mxu0 %v1958_v47 }
 0x691   : > { %1825 = vmatmul.mubr.msk.bf16.vlgmr.msra.gmra.mrb[12].mxu1 %vm1090_vm9, %v1163_v46  ;;  %1830 = vmatprep.subr.bf16.mxu0 %v2117_v2 }
 0x692   : > { %1840 = vmatprep.mubr.msk.bf16.mxu1 %vm2118_vm1, %v2117_v2  ;;  %1837 = vmatpush3.bf16.msra.mxu1 %v1960_v11 }
 0x693   : > { %1838 = vmatprep.subr.bf16.mxu1 %v2117_v2 }
 0x694   : > { %1831 = vmatpush3.bf16.msra.mxu0 %v1959_v48 }
 0x695   : > { %1844 = vmatprep.subr.bf16.mxu0 %v2117_v2 }
 0x762   : > { %v1156_v49 = vpop.f32.mrb[4].mxu0 }
 0x763   : > { %v1820_v50 = vpop.f32.mrb[5].mxu0 }
 0x764   : > { %v1159_v51 = vpop.f32.mrb[6].mxu0  ;;  %v1206_v52 = vpop.f32.mrb[12].mxu1 }
 0x765   : > { %v1821_v53 = vpop.f32.mrb[7].mxu0  ;;  %1213 = vrot.lane.b32.xlu0 %v1206_v52, %s2125_s25  ;;  %v1826_v55 = vpop.f32.mrb[13].mxu1 }
 0x766   : > { %v1209_v56 = vpop.f32.mrb[14].mxu1 }
 0x767   : > { %v1827_v57 = vpop.f32.mrb[15].mxu1  ;;  %v1966_v56 = vld [vmem:[%s2643_s4] sm:$0xff]  }
 0x768   : > { %v1967_v57 = vld [vmem:[%s2643_s4 + $0x8] sm:$0xff]  }
 0x7d7   : > { %v1214_v58 = vpop.permute.xlu0 %1213 }
 0x7d8   : > { %v1216_v59 = vsel %vm983_vm7, %v1156_v49, %v1214_v58 }
 0x7d9   : > { %v1217_v60 = vpack.c.bf16 %v1216_v59, %v1216_v59 }
 0x7db   : > { %1833 = vmatmul.mubr.msk.bf16.vlgmr.msra.gmra.mrb[8].mxu0 %vm878_vm6, %v1217_v60 }
 0x7dc   : > { %1852 = vmatprep.mubr.msk.bf16.mxu0 %vm2118_vm1, %v2117_v2  ;;  %1845 = vmatpush3.bf16.msra.mxu0 %v1962_v22 }
 0x7dd   : > { %1846 = vmatprep.subr.bf16.mxu0 %v2117_v2 }
 0x7e0   : > { %1847 = vmatpush3.bf16.msra.mxu0 %v1963_v23 }
 0x7e1   : > { %1848 = vmatprep.subr.bf16.mxu0 %v2117_v2 }
 0x7e4   : > { %1849 = vmatpush3.bf16.msra.mxu0 %v1964_v24 }
 0x7e5   : > { %1850 = vmatprep.subr.bf16.mxu0 %v2117_v2 }
 0x7e8   : > { %1851 = vmatpush3.bf16.msra.mxu0 %v1965_v25 }
 0x8ae   : > { %v1278_v62 = vpop.f32.mrb[8].mxu0 }
 0x8af   : > { %v1279_v63 = vadd.f32 %v1704_v61, %v1278_v62  ;;  %v1834_v0 = vpop.f32.mrb[9].mxu0  ;;  %v1720_v62 = vld [vmem:[%s2644_s5] ss:$0 sm:$0xff] }
 0x8b0   : > { %v1281_v1 = vpop.f32.mrb[10].mxu0 }
 0x8b1   : > { %v1835_v3 = vpop.f32.mrb[11].mxu0  ;;  %v1284_v4 = vadd.f32 %v1279_v63, %v2443_v54  ;;  %v1961_v54 = vld [vmem:[%s2593_s14 + $0x8] sm:$0xff]  }
 0x8b2   : > { %1839 = vmatpush3.bf16.msra.mxu1 %v1961_v54 }
 0x8b3   : > { %v1285_v5 = vsel %vm878_vm6, %v1284_v4, 0.0  ;;  %1856 = vmatprep.subr.bf16.mxu1 %v2117_v2 }
 0x8b4   : > { %1286 = vadd.xlane.f32.xlu1 %v1285_v5 }
 0x941   : > { %v1287_v6 = vpop.xlane.xlu1 %1286 }
 0x942   : > { %v1288_v7 = vmul.f32 0.03125, %v1287_v6 }
 0x944   : > { %v1289_v8 = vsub.f32 %v1284_v4, %v1288_v7  ;;  %v1722_v4 = vld [vmem:[%s2646_s22] ss:$0 sm:$0xff] }
 0x946   : > { %v1290_v9 = vmul.f32 %v1289_v8, %v1289_v8 }
 0x948   : > { %v1291_v10 = vsel %vm878_vm6, %v1290_v9, 0.0 }
 0x949   : > { %1292 = vadd.xlane.f32.xlu0 %v1291_v10 }
 0x9d6   : > { %v1293_v12 = vpop.xlane.xlu0 %1292 }
 0x9d7   : > { %v1294_v13 = vmul.f32 0.03125, %v1293_v12 }
 0x9d9   : > { %v1295_v14 = vadd.f32 1e-12, %v1294_v13 }
 0x9db   : > { %1978 = vrsqrt.f32 %v1295_v14 }
 0x9e5   : > { %v1979_v15 = vpop.eup %1978 }
 0x9e6   : > { %v1297_v17 = vmul.f32 %v1979_v15, %v1289_v8 }
 0x9e8   : > { %v1305_v19 = vmul.f32 %v1708_v16, %v1297_v17 }
 0x9ea   : > { %v1313_v20 = vadd.f32 %v1709_v18, %v1305_v19 }
 0x9ec   : > { %v1314_v21 = vpack.c.bf16 %v1313_v20, %v1313_v20 }
 0x9ee   : > { %1841 = vmatmul.mubr.msk.bf16.vlgmr.msra.gmra.mrb[16].mxu1 %vm878_vm6, %v1314_v21 }
 0x9ef   : > { %1860 = vmatprep.mubr.msk.bf16.mxu1 %vm2118_vm1, %v2117_v2  ;;  %1857 = vmatpush3.bf16.msra.mxu1 %v1966_v56 }
 0x9f0   : > { %1858 = vmatprep.subr.bf16.mxu1 %v2117_v2  ;;  %v1721_v2 = vld [vmem:[%s2645_s17] ss:$0 sm:$0xff] }
 0x9f3   : > { %1859 = vmatpush3.bf16.msra.mxu1 %v1967_v57 }
 0xac1   : > { %v1375_v27 = vpop.f32.mrb[16].mxu1 }
 0xac2   : > { %v1376_v28 = vadd.f32 %v1710_v26, %v1375_v27  ;;  %v1842_v29 = vpop.f32.mrb[17].mxu1 }
 0xac3   : > { %v1378_v30 = vpop.f32.mrb[18].mxu1 }
 0xac4   : > { %v1381_v31 = vmul.f32 %v1376_v28, %v1376_v28  ;;  %v1843_v32 = vpop.f32.mrb[19].mxu1 }
 0xac6   : > { %v1382_v33 = vmul.f32 %v1381_v31, %v1376_v28 }
 0xac8   : > { %v1383_v34 = vmul.f32 0.044715, %v1382_v33 }
 0xaca   : > { %v1384_v35 = vadd.f32 %v1383_v34, %v1376_v28 }
 0xacc   : > { %v1385_v36 = vmul.f32 0.7978846, %v1384_v35 }
 0xace   : > { %1980 = vtanh.f32 %v1385_v36 }
 0xad8   : > { %v1981_v37 = vpop.eup %1980 }
 0xad9   : > { %v1387_v38 = vadd.f32 1.0, %v1981_v37 }
 0xadb   : > { %v1388_v39 = vmul.f32 0.5, %v1387_v38 }
 0xadd   : > { %v1389_v40 = vmul.f32 %v1388_v39, %v1376_v28 }
 0xadf   : > { %v1390_v41 = vpack.c.bf16 %v1389_v40, %v1389_v40 }
 0xae1   : > { %1853 = vmatmul.mubr.msk.bf16.vlgmr.msra.gmra.mrb[12].mxu0 %vm1430_vm10, %v1390_v41 }
 0xbb4   : > { %v1468_v43 = vpop.f32.mrb[12].mxu0 }
 0xbb5   : > { %v1469_v44 = vadd.f32 %v1714_v42, %v1468_v43  ;;  %v1854_v45 = vpop.f32.mrb[13].mxu0 }
 0xbb6   : > { %v1471_v46 = vpop.f32.mrb[14].mxu0 }
 0xbb7   : > { %v1855_v47 = vpop.f32.mrb[15].mxu0  ;;  %v1474_v48 = vadd.f32 %v1469_v44, %v1313_v20 }
 0xbb9   : > { %v1475_v49 = vsel %vm878_vm6, %v1474_v48, 0.0 }
 0xbba   : > { %1476 = vadd.xlane.f32.xlu0 %v1475_v49 }
 0xc47   : > { %v1477_v50 = vpop.xlane.xlu0 %1476 }
 0xc48   : > { %v1478_v51 = vmul.f32 0.03125, %v1477_v50 }
 0xc4a   : > { %v1479_v52 = vsub.f32 %v1474_v48, %v1478_v51 }
 0xc4c   : > { %v1480_v53 = vmul.f32 %v1479_v52, %v1479_v52 }
 0xc4e   : > { %v1481_v55 = vsel %vm878_vm6, %v1480_v53, 0.0 }
 0xc4f   : > { %1482 = vadd.xlane.f32.xlu1 %v1481_v55 }
 0xcdc   : > { %v1483_v58 = vpop.xlane.xlu1 %1482 }
 0xcdd   : > { %v1484_v59 = vmul.f32 0.03125, %v1483_v58 }
 0xcdf   : > { %v1485_v60 = vadd.f32 1e-12, %v1484_v59 }
 0xce1   : > { %1982 = vrsqrt.f32 %v1485_v60 }
 0xceb   : > { %v1983_v61 = vpop.eup %1982 }
 0xcec   : > { %v1487_v63 = vmul.f32 %v1983_v61, %v1479_v52 }
 0xcee   : > { %v1495_v0 = vmul.f32 %v1720_v62, %v1487_v63 }
 0xcf0   : > { %v1503_v1 = vadd.f32 %v1721_v2, %v1495_v0 }
 0xcf2   : > { %v1504_v3 = vpack.c.bf16 %v1503_v1, %v1503_v1 }
 0xcf4   : > { %1861 = vmatmul.mubr.msk.bf16.vlgmr.msra.gmra.mrb[20].mxu1 %vm878_vm6, %v1504_v3 }
 0xdc7   : > { %v1565_v5 = vpop.f32.mrb[20].mxu1 }
 0xdc8   : > { %v1566_v6 = vadd.f32 %v1722_v4, %v1565_v5  ;;  %v1862_v7 = vpop.f32.mrb[21].mxu1 }
 0xdc9   : > { %v1568_v8 = vpop.f32.mrb[22].mxu1 }
 0xdca   : > { %1571 = vst [vmem:[%s756_s1] sm:$0xff] %v1566_v6  ;;  %v1863_v9 = vpop.f32.mrb[23].mxu1 }
 0xdcb PF: > { %p33_p9 = scmp.ge.s32.totalorder %s2334_s18, 4   ;;  %s2648_s3 = smov %s2100_s28 }
 0xdcc   : > { %s2649_s28 = smov %s2104_s29  ;;  %s2650_s29 = smov %s2345_s26 }
 0xdcd   : > { %s2651_s30 = smov %s2334_s18  ;;  %35 = sbr.rel (!%p33_p9) target bundleno = 19 (0x13), region = 162 }
 0xdd4   :  { %1591 = vsyncpa [#allocation3], 1 }
 0xdd5   :  { %1593 = vsyncpa [#allocation3 + $0x1], 1 }
 0xdd6   :  { %1594 = vsyncpa [#allocation5], 1 }

</bundles_post_ra>
